<compile_context>
chip_gen: v7x
topology: tpu7x:2x2x1
jax: 0.10.0
libtpu: 0.0.40
codegen_flags: <defaults>
</compile_context>

<pallas_src>
import math

import jax
import jax.numpy as jnp
from jax.experimental import pallas as pl
from jax.experimental.pallas import tpu as pltpu

BN_EPS = 1e-5        # torch.nn.BatchNorm1d default eps
NORM_EPS = 1e-12     # F.normalize default eps

LANE = 128           # TPU lane width: pad all feature dims to a multiple of this
GB = 8               # graphs per grid step (sublane-friendly chunk)
_VMEM_LIMIT = 32 * 1024 * 1024   # explicit scoped-VMEM budget (safe on v5e/v6e/v7x)


def _round_up(x, m):
    return ((x + m - 1) // m) * m


def _pad2d(x, rows, cols):
    return jnp.zeros((rows, cols), x.dtype).at[: x.shape[0], : x.shape[1]].set(x)


# ---------------------------------------------------------------------------
# Kernels
# ---------------------------------------------------------------------------
def _make_conv_kernel(has_bn_in):
    """One GIN layer on a chunk of GB graphs.

    Computes h = relu(MLP(S @ x)) for the chunk and emits masked per-chunk
    sum / sum-of-squares of h (for the batch-wide BatchNorm statistics).
    When `has_bn_in`, it first applies the previous layer's BatchNorm affine
    (a, c) to its input and also emits the previous layer's global_add_pool.
    """

    def kernel(*refs):
        if has_bn_in:
            (s_ref, m_ref, x_ref, a_ref, c_ref,
             w1_ref, b1_ref, w2_ref, b2_ref,
             h_ref, stats_ref, pool_ref) = refs
        else:
            (s_ref, m_ref, x_ref,
             w1_ref, b1_ref, w2_ref, b2_ref,
             h_ref, stats_ref) = refs

        mask = m_ref[...]                                 # [GB*MAX_N, 1]
        x = x_ref[...]                                    # [GB*MAX_N, Din]
        if has_bn_in:
            # Previous layer's BatchNorm folded in as per-feature affine;
            # padded nodes zeroed so they never contribute downstream.
            x = (x * a_ref[...] + c_ref[...]) * mask
            gb_p, d_p = pool_ref.shape
            # global_add_pool of the previous layer for this graph chunk.
            pool_ref[...] = jnp.sum(
                x.reshape(gb_p, x.shape[0] // gb_p, d_p), axis=1)

        # GIN aggregation: (1 + eps) * x_i + sum_{j->i} x_j with eps = 0,
        # block-diagonal per graph (no inter-graph edges).
        S = s_ref[...].astype(jnp.float32)                # [GB, MAX_N, MAX_N]
        gb, max_n, _ = S.shape
        din = x.shape[-1]
        xg = x.reshape(gb, max_n, din)
        agg = jnp.einsum("gij,gjd->gid", S, xg,
                         preferred_element_type=jnp.float32)
        agg = agg.reshape(gb * max_n, din)

        # GIN MLP: Linear -> ReLU -> Linear, then the outer F.relu.
        h = jnp.dot(agg, w1_ref[...],
                    preferred_element_type=jnp.float32) + b1_ref[...]
        h = jnp.maximum(h, 0.0)
        h = jnp.dot(h, w2_ref[...],
                    preferred_element_type=jnp.float32) + b2_ref[...]
        h = jnp.maximum(h, 0.0)
        h_ref[...] = h

        # Masked partial sums for the batch-wide BatchNorm statistics.
        hm = h * mask
        ssum = jnp.sum(hm, axis=0, keepdims=True)          # [1, Dout]
        ssq = jnp.sum(hm * h, axis=0, keepdims=True)       # [1, Dout]
        pad = jnp.zeros((stats_ref.shape[0] - 2, ssum.shape[1]), jnp.float32)
        stats_ref[...] = jnp.concatenate([ssum, ssq, pad], axis=0)

    return kernel


def _pool_kernel(m_ref, x_ref, a_ref, c_ref, pool_ref):
    """Apply the last layer's BatchNorm affine and global_add_pool it."""
    x = (x_ref[...] * a_ref[...] + c_ref[...]) * m_ref[...]
    gb, d = pool_ref.shape
    pool_ref[...] = jnp.sum(x.reshape(gb, x.shape[0] // gb, d), axis=1)


def _make_head_kernel(with_proj):
    """L2-normalize the pooled concat; optionally run + normalize proj_head."""

    def kernel(*refs):
        if with_proj:
            x_ref, w1_ref, b1_ref, w2_ref, b2_ref, emb_ref, y_ref = refs
        else:
            x_ref, emb_ref = refs
        x = x_ref[...]
        inv = jax.lax.rsqrt(jnp.maximum(
            jnp.sum(x * x, axis=1, keepdims=True), NORM_EPS * NORM_EPS))
        emb_ref[...] = x * inv
        if with_proj:
            y = jnp.dot(x, w1_ref[...],
                        preferred_element_type=jnp.float32) + b1_ref[...]
            y = jnp.maximum(y, 0.0)
            y = jnp.dot(y, w2_ref[...],
                        preferred_element_type=jnp.float32) + b2_ref[...]
            inv_y = jax.lax.rsqrt(jnp.maximum(
                jnp.sum(y * y, axis=1, keepdims=True), NORM_EPS * NORM_EPS))
            y_ref[...] = y * inv_y

    return kernel


# ---------------------------------------------------------------------------
# Host orchestration
# ---------------------------------------------------------------------------
def encoder_core_in_forward(pparams, S_blocks, x_pad, mask, n_total,
                            num_layers, dim, num_graphs, compute_proj=True):
    """Pallas version of Encoder_Core.in_forward for one (padded) loader batch.

    Returns (y, emb): y = normalized proj_head(xcat) (None if compute_proj is
    False), emb = normalized xcat, both [num_graphs, num_layers * dim].
    """
    Dpad, EDpad = pparams["Dpad"], pparams["EDpad"]
    G_pad, MAX_N, _ = S_blocks.shape
    G_tiles = G_pad // GB
    NB = GB * MAX_N
    ed = num_layers * dim

    grid = (G_tiles,)
    cparams = pltpu.CompilerParams(
        dimension_semantics=("parallel",),     # graph chunks are independent
        vmem_limit_bytes=_VMEM_LIMIT)

    def const_spec(shape):
        nd = len(shape)
        return pl.BlockSpec(shape, lambda g: (0,) * nd)

    def node_spec(d):
        return pl.BlockSpec((NB, d), lambda g: (g, 0))

    s_spec = pl.BlockSpec((GB, MAX_N, MAX_N), lambda g: (g, 0, 0))
    m_spec = pl.BlockSpec((NB, 1), lambda g: (g, 0))
    stats_spec = pl.BlockSpec((8, Dpad), lambda g: (g, 0))
    pool_spec = pl.BlockSpec((GB, Dpad), lambda g: (g, 0))

    inv_n = 1.0 / float(n_total)
    pooled = []
    h = x_pad
    a = c = None

    for i, lp in enumerate(pparams["layers"]):
        din = h.shape[1]
        has_bn_in = i > 0
        inputs = [S_blocks, mask, h]
        in_specs = [s_spec, m_spec, node_spec(din)]
        if has_bn_in:
            inputs += [a, c]
            in_specs += [const_spec((1, Dpad)), const_spec((1, Dpad))]
        inputs += [lp["w1"], lp["b1"], lp["w2"], lp["b2"]]
        in_specs += [const_spec((din, Dpad)), const_spec((1, Dpad)),
                     const_spec((Dpad, Dpad)), const_spec((1, Dpad))]

        out_shape = [jax.ShapeDtypeStruct((G_pad * MAX_N, Dpad), jnp.float32),
                     jax.ShapeDtypeStruct((G_tiles * 8, Dpad), jnp.float32)]
        out_specs = [node_spec(Dpad), stats_spec]
        if has_bn_in:
            out_shape.append(jax.ShapeDtypeStruct((G_pad, Dpad), jnp.float32))
            out_specs.append(pool_spec)

        outs = pl.pallas_call(
            _make_conv_kernel(has_bn_in),
            grid=grid,
            in_specs=in_specs,
            out_specs=tuple(out_specs),
            out_shape=tuple(out_shape),
            compiler_params=cparams,
        )(*inputs)

        if has_bn_in:
            h_new, stats, pool_prev = outs
            pooled.append(pool_prev)
        else:
            h_new, stats = outs

        # Tiny host-side reduction of the per-chunk statistics; fold the
        # training-mode BatchNorm1d (biased batch variance) into an affine.
        st = stats.reshape(G_tiles, 8, Dpad)
        mean = jnp.sum(st[:, 0, :], axis=0) * inv_n
        var = jnp.maximum(jnp.sum(st[:, 1, :], axis=0) * inv_n - mean * mean, 0.0)
        scale = lp["gamma"][0] * jax.lax.rsqrt(var + BN_EPS)
        a = scale[None, :]
        c = (lp["beta"][0] - mean * scale)[None, :]
        h = h_new

    # global_add_pool of the last layer's BatchNorm output.
    last_pool = pl.pallas_call(
        _pool_kernel,
        grid=grid,
        in_specs=[m_spec, node_spec(Dpad),
                  const_spec((1, Dpad)), const_spec((1, Dpad))],
        out_specs=pool_spec,
        out_shape=jax.ShapeDtypeStruct((G_pad, Dpad), jnp.float32),
        compiler_params=cparams,
    )(mask, h, a, c)
    pooled.append(last_pool)

    # Concatenate the per-layer pooled features (true dim columns only) and
    # re-pad to a lane-dense [G_pad, EDpad] slab for the head kernel.
    xcat = jnp.concatenate([p[:, :dim] for p in pooled], axis=1)
    xcat_pad = jnp.zeros((G_pad, EDpad), jnp.float32).at[:, :ed].set(xcat)

    head_spec = pl.BlockSpec((G_pad, EDpad), lambda i: (0, 0))
    head_cparams = pltpu.CompilerParams(dimension_semantics=("arbitrary",),
                                        vmem_limit_bytes=_VMEM_LIMIT)
    if compute_proj:
        pp = pparams["proj"]
        emb_pad, y_pad = pl.pallas_call(
            _make_head_kernel(True),
            grid=(1,),
            in_specs=[head_spec,
                      pl.BlockSpec((EDpad, EDpad), lambda i: (0, 0)),
                      pl.BlockSpec((1, EDpad), lambda i: (0, 0)),
                      pl.BlockSpec((EDpad, EDpad), lambda i: (0, 0)),
                      pl.BlockSpec((1, EDpad), lambda i: (0, 0))],
            out_specs=(head_spec, head_spec),
            out_shape=(jax.ShapeDtypeStruct((G_pad, EDpad), jnp.float32),
                       jax.ShapeDtypeStruct((G_pad, EDpad), jnp.float32)),
            compiler_params=head_cparams,
        )(xcat_pad, pp["w1"], pp["b1"], pp["w2"], pp["b2"])
        y = y_pad[:num_graphs, :ed]
    else:
        emb_pad = pl.pallas_call(
            _make_head_kernel(False),
            grid=(1,),
            in_specs=[head_spec],
            out_specs=head_spec,
            out_shape=jax.ShapeDtypeStruct((G_pad, EDpad), jnp.float32),
            compiler_params=head_cparams,
        )(xcat_pad)
        y = None
    emb = emb_pad[:num_graphs, :ed]
    return y, emb


def build_block_graph(x, edge_index, batch, num_graphs, Fpad):
    """Densify a loader batch into per-graph adjacency blocks + padded features.

    The GIN scatter-add never crosses graphs, so we build one (MAX_N x MAX_N)
    block per graph (bf16: entries are small integers, exact), lane-dense
    zero-padded node features, and a node-validity mask.
    """
    N = int(batch.shape[0])
    counts = jnp.zeros((num_graphs,), jnp.int32).at[batch].add(1)
    MAX_N = max(8, _round_up(int(jnp.max(counts)), 8))
    G_pad = _round_up(num_graphs, GB)

    offsets = jnp.concatenate(
        [jnp.zeros((1,), jnp.int32), jnp.cumsum(counts)[:-1].astype(jnp.int32)])
    local = jnp.arange(N, dtype=jnp.int32) - offsets[batch]
    src, dst = edge_index[0], edge_index[1]

    S = jnp.zeros((G_pad, MAX_N, MAX_N), jnp.float32)
    S = S.at[batch[dst], local[dst], local[src]].add(1.0)   # A[i, j] for j -> i
    S = S.at[batch, local, local].add(1.0)                  # + I  (GIN eps = 0)
    S = S.astype(jnp.bfloat16)                              # lossless, half HBM

    rows = batch.astype(jnp.int32) * MAX_N + local
    x_f = jnp.zeros((N, Fpad), jnp.float32).at[:, : x.shape[1]].set(x)
    x_pad = jnp.zeros((G_pad * MAX_N, Fpad), jnp.float32).at[rows].set(x_f)
    mask = jnp.zeros((G_pad * MAX_N, 1), jnp.float32).at[rows].set(1.0)
    return S, x_pad, mask, N


# ---------------------------------------------------------------------------
# Parameters (same init scheme as the PyTorch module)
# ---------------------------------------------------------------------------
def _linear_init(key, fan_in, fan_out):
    kw, kb = jax.random.split(key)
    bound = 1.0 / math.sqrt(fan_in)
    w = jax.random.uniform(kw, (fan_in, fan_out), jnp.float32, -bound, bound)
    b = jax.random.uniform(kb, (1, fan_out), jnp.float32, -bound, bound)
    return w, b


def init_params(key, num_features, dim, num_gc_layers, num_task):
    ed = dim * num_gc_layers
    keys = jax.random.split(key, num_gc_layers * 2 + 4)
    k = 0
    layers = []
    for i in range(num_gc_layers):
        fin = num_features if i == 0 else dim
        w1, b1 = _linear_init(keys[k], fin, dim); k += 1
        w2, b2 = _linear_init(keys[k], dim, dim); k += 1
        layers.append(dict(w1=w1, b1=b1, w2=w2, b2=b2,
                           gamma=jnp.ones((1, dim), jnp.float32),
                           beta=jnp.zeros((1, dim), jnp.float32)))
    pw1, pb1 = _linear_init(keys[k], ed, ed); k += 1
    pw2, pb2 = _linear_init(keys[k], ed, ed); k += 1
    cw1, cb1 = _linear_init(keys[k], ed, 2 * ed); k += 1        # classifier Net
    cw2, cb2 = _linear_init(keys[k], 2 * ed, num_task); k += 1  # (init only)
    return dict(layers=layers,
                proj=dict(w1=pw1, b1=pb1, w2=pw2, b2=pb2),
                classifier=dict(w1=cw1, b1=cb1, w2=cw2, b2=cb2))


def pad_params(params, num_features, dim, num_gc_layers):
    """Zero-pad all parameters to lane-dense (multiple-of-128) feature dims."""
    Fpad = _round_up(num_features, LANE)
    Dpad = _round_up(dim, LANE)
    EDpad = _round_up(num_gc_layers * dim, LANE)
    layers = []
    for i, lp in enumerate(params["layers"]):
        fin_pad = Fpad if i == 0 else Dpad
        layers.append(dict(
            w1=_pad2d(lp["w1"], fin_pad, Dpad),
            b1=_pad2d(lp["b1"], 1, Dpad),
            w2=_pad2d(lp["w2"], Dpad, Dpad),
            b2=_pad2d(lp["b2"], 1, Dpad),
            gamma=_pad2d(lp["gamma"], 1, Dpad),   # padded gamma/beta stay 0 ->
            beta=_pad2d(lp["beta"], 1, Dpad)))    # padded BN columns stay 0
    proj = dict(
        w1=_pad2d(params["proj"]["w1"], EDpad, EDpad),
        b1=_pad2d(params["proj"]["b1"], 1, EDpad),
        w2=_pad2d(params["proj"]["w2"], EDpad, EDpad),
        b2=_pad2d(params["proj"]["b2"], 1, EDpad))
    return dict(layers=layers, proj=proj, Fpad=Fpad, Dpad=Dpad, EDpad=EDpad)


class GNNPregraphPallas:
    """JAX/Pallas equivalent of GNN_pregraph (forward pass only)."""

    def __init__(self, num_features, dim, num_gc_layers, num_task, key,
                 graph_pooling="sum"):
        if num_gc_layers < 2:
            raise ValueError("num_gc_layers must be bigger than 1")
        self.num_features = num_features
        self.dim = dim
        self.num_gc_layers = num_gc_layers
        self.embedding_dim = dim * num_gc_layers
        self.graph_pooling = graph_pooling
        self.params = init_params(key, num_features, dim, num_gc_layers, num_task)
        self.padded = pad_params(self.params, num_features, dim, num_gc_layers)

    def in_forward(self, x, edge_index, batch, num_graphs, compute_proj=True):
        if x is None:
            x = jnp.ones((batch.shape[0], 1), jnp.float32)
        S, x_pad, mask, n_total = build_block_graph(
            x, edge_index, batch, num_graphs, self.padded["Fpad"])
        return encoder_core_in_forward(
            self.padded, S, x_pad, mask, n_total,
            self.num_gc_layers, self.dim, num_graphs, compute_proj=compute_proj)

    def forward(self, loader):
        # mirrors Encoder_Core.forward: loop the loader, concatenate embeddings.
        ret, lab, tag = None, None, True
        for data in loader:
            # proj_head output is discarded by the caller -> skip the dead work.
            _, emb = self.in_forward(data.get("x"), data["edge_index"],
                                     data["batch"], data["num_graphs"],
                                     compute_proj=False)
            if tag:
                ret, lab, tag = emb, data["y"], False
            else:
                ret = jnp.concatenate([ret, emb], axis=0)
                lab = jnp.concatenate([lab, data["y"]], axis=0)
        return ret, lab


# ---------------------------------------------------------------------------
# Pure-JAX reference (for correctness checking only)
# ---------------------------------------------------------------------------
def reference_in_forward(params, x, edge_index, batch, num_graphs):
    hp = jax.lax.Precision.HIGHEST
    src, dst = edge_index[0], edge_index[1]
    h = x
    pooled = []
    for lp in params["layers"]:
        agg = h + jnp.zeros_like(h).at[dst].add(h[src])
        z = jnp.maximum(jnp.dot(agg, lp["w1"], precision=hp) + lp["b1"], 0.0)
        z = jnp.dot(z, lp["w2"], precision=hp) + lp["b2"]
        z = jnp.maximum(z, 0.0)
        mean = jnp.mean(z, axis=0, keepdims=True)
        var = jnp.mean((z - mean) ** 2, axis=0, keepdims=True)
        h = (z - mean) * jax.lax.rsqrt(var + BN_EPS) * lp["gamma"] + lp["beta"]
        pooled.append(jnp.zeros((num_graphs, h.shape[1]), h.dtype).at[batch].add(h))
    xcat = jnp.concatenate(pooled, axis=1)
    y = jnp.maximum(jnp.dot(xcat, params["proj"]["w1"], precision=hp)
                    + params["proj"]["b1"], 0.0)
    y = jnp.dot(y, params["proj"]["w2"], precision=hp) + params["proj"]["b2"]
    emb = xcat / jnp.maximum(
        jnp.sqrt(jnp.sum(xcat * xcat, axis=1, keepdims=True)), NORM_EPS)
    y = y / jnp.maximum(jnp.sqrt(jnp.sum(y * y, axis=1, keepdims=True)), NORM_EPS)
    return y, emb


def _make_ring_edges(offsets, sizes):
    src, dst = [], []
    for off, n in zip(offsets, sizes):
        for k in range(n):
            a, b = off + k, off + (k + 1) % n
            src += [a, b]
            dst += [b, a]
    return jnp.array([src, dst], dtype=jnp.int32)


if __name__ == "__main__":
    num_features, dim, num_gc_layers, num_task = 8, 32, 3, 4
    key = jax.random.PRNGKey(0)
    kp, kd = jax.random.split(key)

    model = GNNPregraphPallas(num_features, dim, num_gc_layers, num_task, kp)

    # Synthetic "loader": two batches, each with 2 ring graphs of 8 nodes.
    loader = []
    kd1, kd2, kd3, kd4 = jax.random.split(kd, 4)
    for kx, ky in [(kd1, kd2), (kd3, kd4)]:
        n_per, num_graphs = 8, 2
        N = n_per * num_graphs
        batch = jnp.repeat(jnp.arange(num_graphs, dtype=jnp.int32), n_per)
        edge_index = _make_ring_edges([0, n_per], [n_per, n_per])
        x = jax.random.normal(kx, (N, num_features), jnp.float32)
        y = jax.random.randint(ky, (num_graphs,), 0, num_task)
        loader.append(dict(x=x, edge_index=edge_index, batch=batch,
                           y=y, num_graphs=num_graphs))

    # Correctness: fused Pallas pipeline (with proj_head) vs pure-JAX reference.
    d0 = loader[0]
    y_k, emb_k = model.in_forward(d0["x"], d0["edge_index"], d0["batch"],
                                  d0["num_graphs"], compute_proj=True)
    y_r, emb_r = reference_in_forward(model.params, d0["x"], d0["edge_index"],
                                      d0["batch"], d0["num_graphs"])
    assert bool(jnp.allclose(emb_k, emb_r, rtol=2e-2, atol=2e-2)), "emb mismatch"
    assert bool(jnp.allclose(y_k, y_r, rtol=2e-2, atol=2e-2)), "proj mismatch"

    # Full forward (mirrors GNN_pregraph.forward over the loader).
    represent, label = model.forward(loader)
    represent = jax.block_until_ready(represent)
    label = jax.block_until_ready(label)
    assert represent.shape == (4, dim * num_gc_layers)
    assert label.shape == (4,)
    assert bool(jnp.all(jnp.isfinite(represent)))
    print("KERNEL_OK")
</pallas_src>

<mosaic_0001>
module attributes {stable_mosaic.version = 11 : i64} {
  func.func @kernel(%arg0: i32, %arg1: memref<8x8x8xbf16, #tpu.memory_space<vmem>>, %arg2: memref<64x1xf32, #tpu.memory_space<vmem>>, %arg3: memref<64x128xf32, #tpu.memory_space<vmem>>, %arg4: memref<128x128xf32, #tpu.memory_space<vmem>>, %arg5: memref<1x128xf32, #tpu.memory_space<vmem>>, %arg6: memref<128x128xf32, #tpu.memory_space<vmem>>, %arg7: memref<1x128xf32, #tpu.memory_space<vmem>>, %arg8: memref<64x128xf32, #tpu.memory_space<vmem>>, %arg9: memref<8x128xf32, #tpu.memory_space<vmem>>) attributes {dimension_semantics = [#tpu.dimension_semantics<parallel>], iteration_bounds = array<i64: 1>, scalar_prefetch = 0 : i64, scratch_operands = 0 : i64, tpu.core_type = #tpu.core_type<tc>, window_params = [{transform_indices = @transform_0, window_bounds = array<i64: 8, 8, 8>}, {transform_indices = @transform_1, window_bounds = array<i64: 64, 1>}, {transform_indices = @transform_2, window_bounds = array<i64: 64, 128>}, {pipeline_mode = #tpu.pipeline_mode<synchronous>, transform_indices = @transform_3, window_bounds = array<i64: 128, 128>}, {pipeline_mode = #tpu.pipeline_mode<synchronous>, transform_indices = @transform_4, window_bounds = array<i64: 1, 128>}, {pipeline_mode = #tpu.pipeline_mode<synchronous>, transform_indices = @transform_5, window_bounds = array<i64: 128, 128>}, {pipeline_mode = #tpu.pipeline_mode<synchronous>, transform_indices = @transform_6, window_bounds = array<i64: 1, 128>}, {transform_indices = @transform_7, window_bounds = array<i64: 64, 128>}, {transform_indices = @transform_8, window_bounds = array<i64: 8, 128>}]} {
    %c0 = arith.constant 0 : index
    %c0_0 = arith.constant 0 : index
    %0 = vector.load %arg2[%c0, %c0_0] : memref<64x1xf32, #tpu.memory_space<vmem>>, vector<64x1xf32>
    %c0_1 = arith.constant 0 : index
    %c0_2 = arith.constant 0 : index
    %1 = vector.load %arg3[%c0_1, %c0_2] : memref<64x128xf32, #tpu.memory_space<vmem>>, vector<64x128xf32>
    %c0_3 = arith.constant 0 : index
    %c0_4 = arith.constant 0 : index
    %c0_5 = arith.constant 0 : index
    %2 = vector.load %arg1[%c0_3, %c0_4, %c0_5] : memref<8x8x8xbf16, #tpu.memory_space<vmem>>, vector<8x8x8xbf16>
    %3 = arith.extf %2 : vector<8x8x8xbf16> to vector<8x8x8xf32>
    %4 = vector.shape_cast %1 : vector<64x128xf32> to vector<8x8x128xf32>
    "tpu.trace_start"() <{level = 10 : i32, message = "gij,gjd->gid"}> : () -> ()
    %cst = arith.constant dense<0.000000e+00> : vector<8x8x128xf32>
    %5 = tpu.matmul %3, %4, %cst {dimension_numbers = #tpu.dot_dimension_numbers<[2], [1], [1], [2], [0, 0, 0, 1, 1, 2], [0], [0]>} : vector<8x8x8xf32>, vector<8x8x128xf32>, vector<8x8x128xf32> -> vector<8x8x128xf32>
    "tpu.trace_stop"() : () -> ()
    %6 = vector.shape_cast %5 : vector<8x8x128xf32> to vector<64x128xf32>
    %c0_6 = arith.constant 0 : index
    %c0_7 = arith.constant 0 : index
    %7 = vector.load %arg4[%c0_6, %c0_7] : memref<128x128xf32, #tpu.memory_space<vmem>>, vector<128x128xf32>
    %cst_8 = arith.constant dense<0.000000e+00> : vector<64x128xf32>
    %8 = tpu.matmul %6, %7, %cst_8 {dimension_numbers = #tpu.dot_dimension_numbers<[1], [0], [0], [1], [0, 0, 1, 1], [], []>} : vector<64x128xf32>, vector<128x128xf32>, vector<64x128xf32> -> vector<64x128xf32>
    %c0_9 = arith.constant 0 : index
    %c0_10 = arith.constant 0 : index
    %9 = vector.load %arg5[%c0_9, %c0_10] : memref<1x128xf32, #tpu.memory_space<vmem>>, vector<1x128xf32>
    %10 = vector.broadcast %9 : vector<1x128xf32> to vector<64x128xf32>
    %11 = arith.addf %8, %10 : vector<64x128xf32>
    %cst_11 = arith.constant 0.000000e+00 : f32
    %12 = vector.broadcast %cst_11 : f32 to vector<64x128xf32>
    %13 = arith.maximumf %11, %12 : vector<64x128xf32>
    %c0_12 = arith.constant 0 : index
    %c0_13 = arith.constant 0 : index
    %14 = vector.load %arg6[%c0_12, %c0_13] : memref<128x128xf32, #tpu.memory_space<vmem>>, vector<128x128xf32>
    %cst_14 = arith.constant dense<0.000000e+00> : vector<64x128xf32>
    %15 = tpu.matmul %13, %14, %cst_14 {dimension_numbers = #tpu.dot_dimension_numbers<[1], [0], [0], [1], [0, 0, 1, 1], [], []>} : vector<64x128xf32>, vector<128x128xf32>, vector<64x128xf32> -> vector<64x128xf32>
    %c0_15 = arith.constant 0 : index
    %c0_16 = arith.constant 0 : index
    %16 = vector.load %arg7[%c0_15, %c0_16] : memref<1x128xf32, #tpu.memory_space<vmem>>, vector<1x128xf32>
    %17 = vector.broadcast %16 : vector<1x128xf32> to vector<64x128xf32>
    %18 = arith.addf %15, %17 : vector<64x128xf32>
    %cst_17 = arith.constant 0.000000e+00 : f32
    %19 = vector.broadcast %cst_17 : f32 to vector<64x128xf32>
    %20 = arith.maximumf %18, %19 : vector<64x128xf32>
    %c0_18 = arith.constant 0 : index
    %c0_19 = arith.constant 0 : index
    %21 = vector.load %arg8[%c0_18, %c0_19] : memref<64x128xf32, #tpu.memory_space<vmem>>, vector<64x128xf32>
    tpu.vector_store %arg8[%c0_18, %c0_19], %20 {strides = array<i32>} : memref<64x128xf32, #tpu.memory_space<vmem>>, vector<64x128xf32>,
    %22 = vector.broadcast %0 : vector<64x1xf32> to vector<64x128xf32>
    %23 = arith.mulf %20, %22 : vector<64x128xf32>
    %cst_20 = arith.constant dense<0.000000e+00> : vector<128xf32>
    %24 = vector.multi_reduction <add>, %23, %cst_20 [0] : vector<64x128xf32> to vector<128xf32>
    %25 = vector.shape_cast %24 : vector<128xf32> to vector<1x128xf32>
    %26 = arith.mulf %23, %20 : vector<64x128xf32>
    %cst_21 = arith.constant dense<0.000000e+00> : vector<128xf32>
    %27 = vector.multi_reduction <add>, %26, %cst_21 [0] : vector<64x128xf32> to vector<128xf32>
    %28 = vector.shape_cast %27 : vector<128xf32> to vector<1x128xf32>
    %cst_22 = arith.constant 0.000000e+00 : f32
    %29 = vector.broadcast %cst_22 : f32 to vector<6x128xf32>
    %30 = tpu.concatenate %25, %28, %29 in 0 : vector<1x128xf32>, vector<1x128xf32>, vector<6x128xf32> -> vector<8x128xf32>
    %c0_23 = arith.constant 0 : index
    %c0_24 = arith.constant 0 : index
    %31 = vector.load %arg9[%c0_23, %c0_24] : memref<8x128xf32, #tpu.memory_space<vmem>>, vector<8x128xf32>
    tpu.vector_store %arg9[%c0_23, %c0_24], %30 {strides = array<i32>} : memref<8x128xf32, #tpu.memory_space<vmem>>, vector<8x128xf32>,
    return
  }
  func.func @transform_0(%arg0: i32) -> (i32, i32, i32) {
    %c0_i32 = arith.constant 0 : i32
    %c0_i32_0 = arith.constant 0 : i32
    %c0_i32_1 = arith.constant 0 : i32
    return %arg0, %c0_i32, %c0_i32_0 : i32, i32, i32
  }
  func.func @transform_1(%arg0: i32) -> (i32, i32) {
    %c0_i32 = arith.constant 0 : i32
    %c0_i32_0 = arith.constant 0 : i32
    return %arg0, %c0_i32 : i32, i32
  }
  func.func @transform_2(%arg0: i32) -> (i32, i32) {
    %c0_i32 = arith.constant 0 : i32
    %c0_i32_0 = arith.constant 0 : i32
    return %arg0, %c0_i32 : i32, i32
  }
  func.func @transform_3(%arg0: i32) -> (i32, i32) {
    %c0_i32 = arith.constant 0 : i32
    %c0_i32_0 = arith.constant 0 : i32
    %c0_i32_1 = arith.constant 0 : i32
    return %c0_i32, %c0_i32_0 : i32, i32
  }
  func.func @transform_4(%arg0: i32) -> (i32, i32) {
    %c0_i32 = arith.constant 0 : i32
    %c0_i32_0 = arith.constant 0 : i32
    %c0_i32_1 = arith.constant 0 : i32
    return %c0_i32, %c0_i32_0 : i32, i32
  }
  func.func @transform_5(%arg0: i32) -> (i32, i32) {
    %c0_i32 = arith.constant 0 : i32
    %c0_i32_0 = arith.constant 0 : i32
    %c0_i32_1 = arith.constant 0 : i32
    return %c0_i32, %c0_i32_0 : i32, i32
  }
  func.func @transform_6(%arg0: i32) -> (i32, i32) {
    %c0_i32 = arith.constant 0 : i32
    %c0_i32_0 = arith.constant 0 : i32
    %c0_i32_1 = arith.constant 0 : i32
    return %c0_i32, %c0_i32_0 : i32, i32
  }
  func.func @transform_7(%arg0: i32) -> (i32, i32) {
    %c0_i32 = arith.constant 0 : i32
    %c0_i32_0 = arith.constant 0 : i32
    return %arg0, %c0_i32 : i32, i32
  }
  func.func @transform_8(%arg0: i32) -> (i32, i32) {
    %c0_i32 = arith.constant 0 : i32
    %c0_i32_0 = arith.constant 0 : i32
    return %arg0, %c0_i32 : i32, i32
  }
}

</mosaic_0001>

<bundles_post_ra>
// kernel: tpu_custom_call.1
= control target key start
LH: loop header
LB: loop body
LE: loop exit
PB: predicated region body
PF: predicated region fallthrough
CT: control target
= control target key end

     0   :  { %14 = vsyncpa [#allocation3], 0  ;;  %s1700_s0 = inlined_call_operand.hbm [shape: bf16[8,8,8], index: 0, kind: input, shape index: {}]   ;;  %s1701_s1 = inlined_call_operand.vmem [shape: f32[64,1], index: 1, kind: input, shape index: {}]   ;;  %s1702_s2 = inlined_call_operand.vmem [shape: f32[64,128], index: 2, kind: input, shape index: {}]   ;;  %s1703_s3 = inlined_call_operand.hbm [shape: f32[128,128], index: 3, kind: input, shape index: {}]   ;;  %s1704_s4 = inlined_call_operand.vmem [shape: f32[1,128], index: 4, kind: input, shape index: {}]   ;;  %s1705_s5 = inlined_call_operand.hbm [shape: f32[128,128], index: 5, kind: input, shape index: {}]   ;;  %s1706_s6 = inlined_call_operand.vmem [shape: f32[1,128], index: 6, kind: input, shape index: {}]   ;;  %s1707_s7 = inlined_call_operand.hbm [shape: f32[64,128], index: 7, kind: output, shape index: {0}]   ;;  %s1708_s8 = inlined_call_operand.hbm [shape: f32[8,128], index: 8, kind: output, shape index: {1}]  }
   0x1   :  { %15 = vsyncpa [#allocation6], 0 }
   0x2   :  { %16 = vsyncpa [#allocation4], 0 }
   0x3   :  { %17 = vsyncpa [#allocation10], 0  ;;  %s1504_s27 = smov [#allocation5]   ;;  %s1386_s9 = scalar_lea.hbm %s1703_s3, 2048 }
   0x4   :  { %s39_s28 = sshll.u32 %s1504_s27, 4  ;;  %p1387_p0 = scmp.ne.s32.totalorder %s1703_s3, %s1386_s9  ;;  %s40_s28 = int_to_ptr.vmem [resolvable:$true] %s39_s28 }
   0x5   :  { %p1390_p1 = scmp.lt.u32.totalorder %s1386_s9, %s1703_s3 }
   0x7   :  { %p1392_p2 = pnand %p1390_p1, %p1387_p0 }
   0x9   :  { %1395 = shalt.err (!%p1392_p2)
}
   0xa   :  { %s1396_s14 = scalar_lea.vmem %s40_s28, 2048  ;;  %p1401_p4 = scmp.lt.s32.totalorder %s40_s28, %s40_s28 }
   0xb   :  { %p1397_p3 = scmp.ne.s32.totalorder %s40_s28, %s1396_s14  ;;  %p1402_p5 = scmp.lt.s32.totalorder %s1396_s14, %s1396_s14 }
   0xd   :  { %p1403_p6 = por %p1402_p5, %p1401_p4 }
   0xf   :  { %p1404_p7 = pnand %p1403_p6, %p1397_p3 }
  0x11   :  { %1407 = shalt.err (!%p1404_p7)
}
  0x12   :  { %s1505_s15 = smov 128   ;;  %s1506_s16 = smov 8  }
  0x13   :  { %45 = dma.hbm_to_vmem [thread:$0]  %s1703_s3, 2048, %s40_s28, [#allocation6], %s1505_s15, %s1505_s15, %s1506_s16  }
  0x14   :  { %s1507_s19 = smov [#allocation2]   ;;  %s1408_s23 = scalar_lea.hbm %s1700_s0, 512 }
  0x15   :  { %s23_s20 = sshll.u32 %s1507_s19, 4  ;;  %p1409_p8 = scmp.ne.s32.totalorder %s1700_s0, %s1408_s23  ;;  %s24_s20 = int_to_ptr.vmem [resolvable:$true] %s23_s20 }
  0x16   :  { %p1412_p9 = scmp.lt.u32.totalorder %s1408_s23, %s1700_s0 }
  0x18   :  { %p1414_p10 = pnand %p1412_p9, %p1409_p8 }
  0x1a   :  { %1417 = shalt.err (!%p1414_p10)
}
  0x1b   :  { %s1418_s29 = scalar_lea.vmem %s24_s20, 512  ;;  %p1423_p12 = scmp.lt.s32.totalorder %s24_s20, %s24_s20 }
  0x1c   :  { %p1419_p11 = scmp.ne.s32.totalorder %s24_s20, %s1418_s29  ;;  %p1424_p13 = scmp.lt.s32.totalorder %s1418_s29, %s1418_s29 }
  0x1e   :  { %p1425_p0 = por %p1424_p13, %p1423_p12 }
  0x20   :  { %p1426_p1 = pnand %p1425_p0, %p1419_p11 }
  0x22   :  { %1429 = shalt.err (!%p1426_p1)
}
  0x23   :  { %s1508_s3 = smov 64   ;;  %s1509_s28 = smov 4  }
  0x24   :  { %29 = dma.hbm_to_vmem [thread:$0]  %s1700_s0, 512, %s24_s20, [#allocation3], %s1508_s3, %s1508_s3, %s1509_s28  }
  0x25   :  { %s1510_s10 = smov [#allocation7]   ;;  %s1430_s14 = scalar_lea.hbm %s1705_s5, 2048 }
  0x26   :  { %s53_s11 = sshll.u32 %s1510_s10, 4  ;;  %p1431_p2 = scmp.ne.s32.totalorder %s1705_s5, %s1430_s14  ;;  %s54_s11 = int_to_ptr.vmem [resolvable:$true] %s53_s11 }
  0x27   :  { %p1434_p3 = scmp.lt.u32.totalorder %s1430_s14, %s1705_s5 }
  0x29   :  { %p1436_p4 = pnand %p1434_p3, %p1431_p2 }
  0x2b   :  { %1439 = shalt.err (!%p1436_p4)
}
  0x2c   :  { %s1440_s22 = scalar_lea.vmem %s54_s11, 2048  ;;  %p1445_p6 = scmp.lt.s32.totalorder %s54_s11, %s54_s11 }
  0x2d   :  { %p1441_p5 = scmp.ne.s32.totalorder %s54_s11, %s1440_s22  ;;  %p1446_p7 = scmp.lt.s32.totalorder %s1440_s22, %s1440_s22 }
  0x2f   :  { %p1447_p8 = por %p1446_p7, %p1445_p6 }
  0x31   :  { %p1448_p9 = pnand %p1447_p8, %p1441_p5 }
  0x33   :  { %1451 = shalt.err (!%p1448_p9)
}
  0x34   :  { %59 = dma.hbm_to_vmem [thread:$0]  %s1705_s5, 2048, %s54_s11, [#allocation6], %s1505_s15, %s1505_s15, %s1506_s16  }
  0x35   :  { %1496 = dma.done.wait [#allocation3], 512  }
  0x36   :  { %1497 = vsyncadd [#allocation3], 4294966784 }
  0x37   :  { %1498 = dma.done.wait [#allocation6], 4096  }
  0x38   :  { %1499 = vsyncadd [#allocation6], 4294963200  ;;  %v1511_v0 = vmov 0.0   ;;  %vm1512_vm0 = vmmov 0   ;;  %v79_v1 = vld [vmem:[%s1702_s2] sm:$0xff]  ;;  %v80_v2 = vld [vmem:[%s1702_s2 + $0x8] sm:$0xff] }
  0x39   :  { %1180 = vmatprep.subr.mxu0 %v1511_v0  ;;  %1185 = vmatprep.subr.mxu1 %v1511_v0  ;;  %v1098_v3 = vld [vmem:[#allocation2] sm:$0xff]   ;;  %vm103_vm1 = vcmask 64512   ;;  %v81_v6 = vld [vmem:[%s1702_s2 + $0x10] sm:$0xff]  ;;  %v82_v7 = vld [vmem:[%s1702_s2 + $0x18] sm:$0xff] }
  0x3a   :  { %1182 = vmatprep.mubr.msk.f32.mxu0 %vm1512_vm0, %v1511_v0  ;;  %1187 = vmatprep.mubr.msk.f32.mxu1 %vm1512_vm0, %v1511_v0  ;;  %v1099_v4 = vunpack.c.l.bf16 %v1098_v3  ;;  %v1100_v5 = vunpack.c.h.bf16 %v1098_v3  ;;  %v1113_v8 = vld [vmem:[#allocation2 + $0x8] sm:$0xff]   ;;  %v1114_v11 = vld [vmem:[#allocation2 + $0x10] sm:$0xff]   ;;  %v83_v12 = vld [vmem:[%s1702_s2 + $0x20] sm:$0xff] }
  0x3b   :  { %1181 = vmatpush3.msra.mxu0 %v79_v1  ;;  %1186 = vmatpush3.msra.mxu1 %v80_v2  ;;  %v1103_v9 = vunpack.c.l.bf16 %v1113_v8  ;;  %v1104_v10 = vunpack.c.h.bf16 %v1113_v8  ;;  %v84_v13 = vld [vmem:[%s1702_s2 + $0x28] sm:$0xff]  ;;  %v1107_v14 = vunpack.c.l.bf16 %v1114_v11  ;;  %v1108_v15 = vunpack.c.h.bf16 %v1114_v11  ;;  %v688_v16 = vld [vmem:[#allocation5] sm:$0xff]  ;;  %v1115_v18 = vld [vmem:[#allocation2 + $0x18] sm:$0xff]  }
  0x3c   :  { %1190 = vmatprep.subr.mxu0 %v1511_v0  ;;  %1195 = vmatprep.subr.mxu1 %v1511_v0  ;;  %v689_v17 = vld [vmem:[#allocation5 + $0x8] sm:$0xff]  ;;  %v85_v19 = vld [vmem:[%s1702_s2 + $0x30] sm:$0xff]  ;;  %v86_v20 = vld [vmem:[%s1702_s2 + $0x38] sm:$0xff]  ;;  %v1111_v24 = vunpack.c.l.bf16 %v1115_v18  ;;  %v1112_v25 = vunpack.c.h.bf16 %v1115_v18 }
  0x3d   :  { %1183 = vmatmul.mubr.msk.f32.vlgmr.msra.gmra.mrb[0].mxu0 %vm103_vm1, %v1099_v4  ;;  %1188 = vmatmul.mubr.msk.f32.vlgmr.msra.gmra.mrb[0].mxu1 %vm103_vm1, %v1100_v5  ;;  %v1308_v21 = vpack.c.bf16 %v689_v17, %v688_v16  ;;  %v690_v22 = vld [vmem:[#allocation5 + $0x10] sm:$0xff]  ;;  %v691_v23 = vld [vmem:[#allocation5 + $0x18] sm:$0xff]  ;;  %v692_v27 = vld [vmem:[#allocation5 + $0x20] sm:$0xff] }
  0x3e   :  { %1191 = vmatpush3.msra.mxu0 %v81_v6  ;;  %1196 = vmatpush3.msra.mxu1 %v82_v7  ;;  %v1312_v26 = vpack.c.bf16 %v691_v23, %v690_v22  ;;  %v693_v28 = vld [vmem:[#allocation5 + $0x28] sm:$0xff]  ;;  %v694_v30 = vld [vmem:[#allocation5 + $0x30] sm:$0xff]  ;;  %v695_v31 = vld [vmem:[#allocation5 + $0x38] sm:$0xff]  ;;  %v1513_v23 = vmov 0  }
  0x3f   :  { %1192 = vmatprep.mubr.msk.f32.mxu0 %vm1512_vm0, %v1511_v0  ;;  %1197 = vmatprep.mubr.msk.f32.mxu1 %vm1512_vm0, %v1511_v0  ;;  %v1316_v29 = vpack.c.bf16 %v693_v28, %v692_v27  ;;  %v1320_v32 = vpack.c.bf16 %v695_v31, %v694_v30  ;;  %v696_v33 = vld [vmem:[#allocation5 + $0x40] sm:$0xff]  ;;  %v697_v34 = vld [vmem:[#allocation5 + $0x48] sm:$0xff]  ;;  %v698_v36 = vld [vmem:[#allocation5 + $0x50] sm:$0xff] }
  0x40   :  { %1200 = vmatprep.subr.mxu0 %v1511_v0  ;;  %1205 = vmatprep.subr.mxu1 %v1511_v0  ;;  %v1324_v35 = vpack.c.bf16 %v697_v34, %v696_v33  ;;  %v699_v37 = vld [vmem:[#allocation5 + $0x58] sm:$0xff]  ;;  %v700_v39 = vld [vmem:[#allocation5 + $0x60] sm:$0xff]  ;;  %v701_v40 = vld [vmem:[#allocation5 + $0x68] sm:$0xff] }
  0x41   :  { %1193 = vmatmul.mubr.msk.f32.vlgmr.msra.gmra.mrb[2].mxu0 %vm103_vm1, %v1103_v9  ;;  %1198 = vmatmul.mubr.msk.f32.vlgmr.msra.gmra.mrb[2].mxu1 %vm103_vm1, %v1104_v10  ;;  %v1328_v38 = vpack.c.bf16 %v699_v37, %v698_v36  ;;  %v1332_v41 = vpack.c.bf16 %v701_v40, %v700_v39  ;;  %v702_v42 = vld [vmem:[#allocation5 + $0x70] sm:$0xff]  ;;  %v703_v43 = vld [vmem:[#allocation5 + $0x78] sm:$0xff]  ;;  %v824_v45 = vld [vmem:[#allocation7] sm:$0xff] }
  0x42   :  { %1201 = vmatpush3.msra.mxu0 %v83_v12  ;;  %1206 = vmatpush3.msra.mxu1 %v84_v13  ;;  %v1336_v44 = vpack.c.bf16 %v703_v43, %v702_v42  ;;  %v825_v46 = vld [vmem:[#allocation7 + $0x8] sm:$0xff]  ;;  %v826_v47 = vld [vmem:[#allocation7 + $0x10] sm:$0xff]  ;;  %v827_v49 = vld [vmem:[#allocation7 + $0x18] sm:$0xff] }
  0x43   :  { %1202 = vmatprep.mubr.msk.f32.mxu0 %vm1512_vm0, %v1511_v0  ;;  %1207 = vmatprep.mubr.msk.f32.mxu1 %vm1512_vm0, %v1511_v0  ;;  %v1340_v48 = vpack.c.bf16 %v825_v46, %v824_v45  ;;  %v1344_v50 = vpack.c.bf16 %v827_v49, %v826_v47  ;;  %v828_v51 = vld [vmem:[#allocation7 + $0x20] sm:$0xff]  ;;  %v829_v52 = vld [vmem:[#allocation7 + $0x28] sm:$0xff]  ;;  %v830_v54 = vld [vmem:[#allocation7 + $0x30] sm:$0xff] }
  0x44   :  { %1210 = vmatprep.subr.mxu0 %v1511_v0  ;;  %1215 = vmatprep.subr.mxu1 %v1511_v0  ;;  %v1348_v53 = vpack.c.bf16 %v829_v52, %v828_v51  ;;  %v831_v55 = vld [vmem:[#allocation7 + $0x38] sm:$0xff]  ;;  %v832_v57 = vld [vmem:[#allocation7 + $0x40] sm:$0xff]  ;;  %v833_v58 = vld [vmem:[#allocation7 + $0x48] sm:$0xff] }
  0x45   :  { %1203 = vmatmul.mubr.msk.f32.vlgmr.msra.gmra.mrb[4].mxu0 %vm103_vm1, %v1107_v14  ;;  %1208 = vmatmul.mubr.msk.f32.vlgmr.msra.gmra.mrb[4].mxu1 %vm103_vm1, %v1108_v15  ;;  %v1352_v56 = vpack.c.bf16 %v831_v55, %v830_v54  ;;  %v1356_v59 = vpack.c.bf16 %v833_v58, %v832_v57  ;;  %v834_v60 = vld [vmem:[#allocation7 + $0x50] sm:$0xff]  ;;  %v835_v61 = vld [vmem:[#allocation7 + $0x58] sm:$0xff]  ;;  %v836_v63 = vld [vmem:[#allocation7 + $0x60] sm:$0xff] }
  0x46   :  { %1211 = vmatpush3.msra.mxu0 %v85_v19  ;;  %1216 = vmatpush3.msra.mxu1 %v86_v20  ;;  %v1360_v62 = vpack.c.bf16 %v835_v61, %v834_v60  ;;  %v838_v18 = vld [vmem:[#allocation7 + $0x70] sm:$0xff]  ;;  %v839_v19 = vld [vmem:[#allocation7 + $0x78] sm:$0xff]  ;;  %v76_v27 = vld [vmem:[%s1701_s1 + $0x28] sm:$0xff] }
  0x47   :  { %1212 = vmatprep.mubr.msk.f32.mxu0 %vm1512_vm0, %v1511_v0  ;;  %1217 = vmatprep.mubr.msk.f32.mxu1 %vm1512_vm0, %v1511_v0  ;;  %v837_v0 = vld [vmem:[#allocation7 + $0x68] sm:$0xff]  ;;  %v1368_v20 = vpack.c.bf16 %v839_v19, %v838_v18  ;;  %v73_v22 = vld [vmem:[%s1701_s1 + $0x10] sm:$0xff]  ;;  %v1095_v30 = vld [vmem:[%s1704_s4] ss:$0 sm:$0xff] }
  0x48   :  { %1309 = vmatprep.subr.bf16.mxu0 %v1308_v21  ;;  %1341 = vmatprep.subr.bf16.mxu1 %v1340_v48  ;;  %v1364_v1 = vpack.c.bf16 %v837_v0, %v836_v63  ;;  %v77_v28 = vld [vmem:[%s1701_s1 + $0x30] sm:$0xff] }
  0x49   :  { %1213 = vmatmul.mubr.msk.f32.vlgmr.msra.gmra.mrb[6].mxu0 %vm103_vm1, %v1111_v24  ;;  %1218 = vmatmul.mubr.msk.f32.vlgmr.msra.gmra.mrb[6].mxu1 %vm103_vm1, %v1112_v25  ;;  %v72_v24 = vld [vmem:[%s1701_s1 + $0x8] sm:$0xff]  ;;  %v74_v25 = vld [vmem:[%s1701_s1 + $0x18] sm:$0xff] }
  0x4a   :  { %1311 = vmatpush3.bf16.msra.mxu0 %v1308_v21  ;;  %1343 = vmatpush3.bf16.msra.mxu1 %v1340_v48  ;;  %v71_v21 = vld [vmem:[%s1701_s1] sm:$0xff] }
  0x4b   :  { %1313 = vmatprep.subr.bf16.mxu0 %v1312_v26  ;;  %1345 = vmatprep.subr.bf16.mxu1 %v1344_v50 }
  0x4c   :  { %1384 = vset.pattern.permute.xlu0 %v1513_v23  ;;  %1385 = vset.pattern.permute.xlu1 %v1513_v23 }
  0x4d   :  { %970 = vperm.xlu0 %1384, %v71_v21   ;;  %980 = vperm.xlu1 %1385, %v73_v22  }
  0x4e   :  { %1315 = vmatpush3.bf16.msra.mxu0 %v1312_v26  ;;  %1347 = vmatpush3.bf16.msra.mxu1 %v1344_v50  ;;  %v75_v26 = vld [vmem:[%s1701_s1 + $0x20] sm:$0xff] }
  0x4f   :  { %1317 = vmatprep.subr.bf16.mxu0 %v1316_v29  ;;  %1349 = vmatprep.subr.bf16.mxu1 %v1348_v53 }
  0x51   :  { %975 = vperm.xlu0 %1384, %v72_v24   ;;  %985 = vperm.xlu1 %1385, %v74_v25  }
  0x52   :  { %1319 = vmatpush3.bf16.msra.mxu0 %v1316_v29  ;;  %1351 = vmatpush3.bf16.msra.mxu1 %v1348_v53  ;;  %v78_v29 = vld [vmem:[%s1701_s1 + $0x38] sm:$0xff] }
  0x53   :  { %1321 = vmatprep.subr.bf16.mxu0 %v1320_v32  ;;  %1353 = vmatprep.subr.bf16.mxu1 %v1352_v56 }
  0x55   :  { %990 = vperm.xlu0 %1384, %v75_v26   ;;  %995 = vperm.xlu1 %1385, %v76_v27  }
  0x56   :  { %1323 = vmatpush3.bf16.msra.mxu0 %v1320_v32  ;;  %1355 = vmatpush3.bf16.msra.mxu1 %v1352_v56  ;;  %v1096_v56 = vld [vmem:[%s1706_s6] ss:$0 sm:$0xff]  ;;  %s1514_s6 = smov [#allocation8]  }
  0x57   :  { %1325 = vmatprep.subr.bf16.mxu0 %v1324_v35  ;;  %1357 = vmatprep.subr.bf16.mxu1 %v1356_v59  ;;  %s1060_s9 = sshll.u32 %s1514_s6, 4  ;;  %s1061_s9 = int_to_ptr.vmem [resolvable:$true] %s1060_s9 }
  0x58   :  { %s1452_s10 = scalar_lea.vmem %s1061_s9, 1024  ;;  %p1457_p11 = scmp.lt.s32.totalorder %s1061_s9, %s1061_s9 }
  0x59   :  { %1000 = vperm.xlu0 %1384, %v77_v28   ;;  %1005 = vperm.xlu1 %1385, %v78_v29   ;;  %p1453_p10 = scmp.ne.s32.totalorder %s1061_s9, %s1452_s10  ;;  %p1458_p12 = scmp.lt.s32.totalorder %s1452_s10, %s1452_s10 }
  0x5a   :  { %1327 = vmatpush3.bf16.msra.mxu0 %v1324_v35  ;;  %1359 = vmatpush3.bf16.msra.mxu1 %v1356_v59 }
  0x5b   :  { %1329 = vmatprep.subr.bf16.mxu0 %v1328_v38  ;;  %1361 = vmatprep.subr.bf16.mxu1 %v1360_v62  ;;  %p1459_p13 = por %p1458_p12, %p1457_p11 }
  0x5d   :  { %p1460_p0 = pnand %p1459_p13, %p1453_p10 }
  0x5e   :  { %1331 = vmatpush3.bf16.msra.mxu0 %v1328_v38  ;;  %1363 = vmatpush3.bf16.msra.mxu1 %v1360_v62 }
  0x5f   :  { %1333 = vmatprep.subr.bf16.mxu0 %v1332_v41  ;;  %1365 = vmatprep.subr.bf16.mxu1 %v1364_v1 }
  0x62   :  { %1335 = vmatpush3.bf16.msra.mxu0 %v1332_v41  ;;  %1367 = vmatpush3.bf16.msra.mxu1 %v1364_v1 }
  0x63   :  { %1337 = vmatprep.subr.bf16.mxu0 %v1336_v44  ;;  %1369 = vmatprep.subr.bf16.mxu1 %v1368_v20 }
  0x66   :  { %1339 = vmatpush3.bf16.msra.mxu0 %v1336_v44  ;;  %1371 = vmatpush3.bf16.msra.mxu1 %v1368_v20 }
  0xcc   :  { %v971_v55 = vpop.permute.xlu0 %970  ;;  %v981_v57 = vpop.permute.xlu1 %980 }
  0xd0   :  { %v976_v63 = vpop.permute.xlu0 %975 }
  0xd4   :  { %v991_v20 = vpop.permute.xlu0 %990 }
 0x110   :  { %v173_v2 = vpop.f32.mrb[0].mxu0  ;;  %v246_v3 = vpop.f32.mrb[0].mxu1 }
 0x111   :  { %v1184_v4 = vpop.f32.mrb[1].mxu0  ;;  %v1189_v5 = vpop.f32.mrb[1].mxu1  ;;  %1252 = vmatprep.mubr.f32.mxu0 %v173_v2 }
 0x112   :  { %1253 = vmatmul.mubr.f32.vlgmr.msra.gmra.mrb[8].mxu0 %v246_v3  ;;  %v986_v2 = vpop.permute.xlu1 %985 }
 0x114   :  { %v319_v6 = vpop.f32.mrb[2].mxu0  ;;  %v392_v7 = vpop.f32.mrb[2].mxu1 }
 0x115   :  { %v1194_v8 = vpop.f32.mrb[3].mxu0  ;;  %v1199_v9 = vpop.f32.mrb[3].mxu1  ;;  %1255 = vmatprep.mubr.f32.mxu0 %v319_v6 }
 0x116   :  { %1256 = vmatmul.mubr.f32.gmra.mrb[10].mxu0 %v392_v7  ;;  %v996_v21 = vpop.permute.xlu1 %995 }
 0x118   :  { %v465_v10 = vpop.f32.mrb[4].mxu0  ;;  %v538_v11 = vpop.f32.mrb[4].mxu1 }
 0x119   :  { %v1204_v12 = vpop.f32.mrb[5].mxu0  ;;  %v1209_v13 = vpop.f32.mrb[5].mxu1  ;;  %1258 = vmatprep.mubr.f32.mxu0 %v465_v10 }
 0x11a   :  { %1259 = vmatmul.mubr.f32.gmra.mrb[12].mxu0 %v538_v11 }
 0x11c   :  { %v611_v14 = vpop.f32.mrb[6].mxu0  ;;  %v684_v15 = vpop.f32.mrb[6].mxu1 }
 0x11d   :  { %v1214_v16 = vpop.f32.mrb[7].mxu0  ;;  %v1219_v17 = vpop.f32.mrb[7].mxu1  ;;  %1261 = vmatprep.mubr.f32.mxu0 %v611_v14 }
 0x11e   :  { %1262 = vmatmul.mubr.f32.gmra.mrb[14].mxu0 %v684_v15 }
 0x1e5   :  { %v1254_v31 = vpop.f32.mrb[8].mxu0 }
 0x1e6   :  { %v783_v32 = vadd.f32 %v1254_v31, %v1095_v30  ;;  %v777_v33 = vpop.f32.mrb[9].mxu0 }
 0x1e7   :  { %v778_v34 = vadd.f32 %v1095_v30, %v777_v33 }
 0x1e8   :  { %v817_v37 = vmax.f32 %v783_v32, 0.0 }
 0x1e9   :  { %v816_v35 = vmax.f32 %v778_v34, 0.0  ;;  %v1257_v36 = vpop.f32.mrb[10].mxu0 }
 0x1ea   :  { %v793_v38 = vadd.f32 %v1257_v36, %v1095_v30  ;;  %v787_v39 = vpop.f32.mrb[11].mxu0 }
 0x1eb   :  { %v788_v40 = vadd.f32 %v1095_v30, %v787_v39  ;;  %1296 = vmatprep.mubr.f32.mxu1 %v816_v35 }
 0x1ec   :  { %1297 = vmatmul.mubr.f32.vlgmr.msra.gmra.mrb[8].mxu1 %v817_v37  ;;  %v819_v43 = vmax.f32 %v793_v38, 0.0 }
 0x1ed   :  { %v818_v41 = vmax.f32 %v788_v40, 0.0  ;;  %v1260_v42 = vpop.f32.mrb[12].mxu0  ;;  %v1001_v40 = vpop.permute.xlu0 %1000 }
 0x1ee   :  { %v803_v44 = vadd.f32 %v1260_v42, %v1095_v30  ;;  %v797_v45 = vpop.f32.mrb[13].mxu0 }
 0x1ef   :  { %v798_v46 = vadd.f32 %v1095_v30, %v797_v45  ;;  %1299 = vmatprep.mubr.f32.mxu1 %v818_v41  ;;  %v1006_v41 = vpop.permute.xlu1 %1005 }
 0x1f0   :  { %1300 = vmatmul.mubr.f32.gmra.mrb[10].mxu1 %v819_v43  ;;  %v821_v49 = vmax.f32 %v803_v44, 0.0 }
 0x1f1   :  { %v820_v47 = vmax.f32 %v798_v46, 0.0  ;;  %v1263_v48 = vpop.f32.mrb[14].mxu0 }
 0x1f2   :  { %v813_v50 = vadd.f32 %v1263_v48, %v1095_v30  ;;  %v807_v51 = vpop.f32.mrb[15].mxu0 }
 0x1f3   :  { %v808_v52 = vadd.f32 %v1095_v30, %v807_v51  ;;  %1302 = vmatprep.mubr.f32.mxu1 %v820_v47 }
 0x1f4   :  { %1303 = vmatmul.mubr.f32.gmra.mrb[12].mxu1 %v821_v49  ;;  %v823_v54 = vmax.f32 %v813_v50, 0.0 }
 0x1f5   :  { %v822_v53 = vmax.f32 %v808_v52, 0.0 }
 0x1f7   :  { %1305 = vmatprep.mubr.f32.mxu1 %v822_v53 }
 0x1f8   :  { %1306 = vmatmul.mubr.f32.gmra.mrb[14].mxu1 %v823_v54 }
 0x2bf   :  { %v1298_v58 = vpop.f32.mrb[8].mxu1 }
 0x2c0   :  { %v919_v59 = vadd.f32 %v1298_v58, %v1096_v56  ;;  %v913_v60 = vpop.f32.mrb[9].mxu1 }
 0x2c1   :  { %v914_v61 = vadd.f32 %v1096_v56, %v913_v60 }
 0x2c2   :  { %v953_v62 = vmax.f32 %v919_v59, 0.0 }
 0x2c3   :  { %v952_v0 = vmax.f32 %v914_v61, 0.0  ;;  %v1301_v1 = vpop.f32.mrb[10].mxu1 }
 0x2c4   :  { %961 = vst [vmem:[#allocation8 + $0x8] sm:$0xff] %v953_v62  ;;  %v1009_v3 = vmul.f32 %v976_v63, %v953_v62  ;;  %v929_v4 = vadd.f32 %v1301_v1, %v1096_v56  ;;  %v923_v5 = vpop.f32.mrb[11].mxu1 }
 0x2c5   :  { %960 = vst [vmem:[#allocation8] sm:$0xff] %v952_v0  ;;  %v1008_v6 = vmul.f32 %v971_v55, %v952_v0  ;;  %v924_v7 = vadd.f32 %v1096_v56, %v923_v5 }
 0x2c6   :  { %v1030_v8 = vmul.f32 %v1009_v3, %v953_v62  ;;  %v955_v9 = vmax.f32 %v929_v4, 0.0 }
 0x2c7   :  { %v1016_v10 = vadd.f32 %v1009_v3, %v1008_v6  ;;  %v1029_v11 = vmul.f32 %v1008_v6, %v952_v0  ;;  %v954_v12 = vmax.f32 %v924_v7, 0.0  ;;  %v1304_v13 = vpop.f32.mrb[12].mxu1 }
 0x2c8   :  { %963 = vst [vmem:[#allocation8 + $0x18] sm:$0xff] %v955_v9  ;;  %v1011_v14 = vmul.f32 %v986_v2, %v955_v9  ;;  %v939_v15 = vadd.f32 %v1304_v13, %v1096_v56  ;;  %v933_v16 = vpop.f32.mrb[13].mxu1 }
 0x2c9   :  { %v1037_v17 = vadd.f32 %v1030_v8, %v1029_v11  ;;  %962 = vst [vmem:[#allocation8 + $0x10] sm:$0xff] %v954_v12  ;;  %v1010_v18 = vmul.f32 %v981_v57, %v954_v12  ;;  %v934_v19 = vadd.f32 %v1096_v56, %v933_v16 }
 0x2ca   :  { %v957_v22 = vmax.f32 %v939_v15, 0.0  ;;  %v1032_v27 = vmul.f32 %v1011_v14, %v955_v9 }
 0x2cb   :  { %v1017_v23 = vadd.f32 %v1016_v10, %v1010_v18  ;;  %v1031_v24 = vmul.f32 %v1010_v18, %v954_v12  ;;  %v956_v25 = vmax.f32 %v934_v19, 0.0  ;;  %v1307_v26 = vpop.f32.mrb[14].mxu1 }
 0x2cc   :  { %965 = vst [vmem:[#allocation8 + $0x28] sm:$0xff] %v957_v22  ;;  %v1013_v28 = vmul.f32 %v996_v21, %v957_v22  ;;  %v949_v29 = vadd.f32 %v1307_v26, %v1096_v56  ;;  %v943_v30 = vpop.f32.mrb[15].mxu1 }
 0x2cd   :  { %v1038_v31 = vadd.f32 %v1037_v17, %v1031_v24  ;;  %964 = vst [vmem:[#allocation8 + $0x20] sm:$0xff] %v956_v25  ;;  %v1012_v32 = vmul.f32 %v991_v20, %v956_v25  ;;  %v1018_v33 = vadd.f32 %v1017_v23, %v1011_v14  ;;  %v944_v34 = vadd.f32 %v1096_v56, %v943_v30 }
 0x2ce   :  { %v959_v35 = vmax.f32 %v949_v29, 0.0  ;;  %v1034_v42 = vmul.f32 %v1013_v28, %v957_v22 }
 0x2cf   :  { %v1019_v36 = vadd.f32 %v1018_v33, %v1012_v32  ;;  %v1033_v37 = vmul.f32 %v1012_v32, %v956_v25  ;;  %v1039_v38 = vadd.f32 %v1038_v31, %v1032_v27  ;;  %v958_v39 = vmax.f32 %v944_v34, 0.0 }
 0x2d0   :  { %967 = vst [vmem:[#allocation8 + $0x38] sm:$0xff] %v959_v35  ;;  %v1015_v44 = vmul.f32 %v1006_v41, %v959_v35 }
 0x2d1   :  { %v1040_v43 = vadd.f32 %v1039_v38, %v1033_v37  ;;  %966 = vst [vmem:[#allocation8 + $0x30] sm:$0xff] %v958_v39  ;;  %v1014_v45 = vmul.f32 %v1001_v40, %v958_v39  ;;  %v1020_v46 = vadd.f32 %v1019_v36, %v1013_v28 }
 0x2d2   :  { %1463 = shalt.err (!%p1460_p0)
}
 0x2d3   :  { %s1464_s13 = scalar_lea.hbm %s1707_s7, 1024 }
 0x2d4   :  { %p1465_p1 = scmp.ne.s32.totalorder %s1707_s7, %s1464_s13  ;;  %p1468_p2 = scmp.lt.u32.totalorder %s1464_s13, %s1707_s7 }
 0x2d6   :  { %p1470_p3 = pnand %p1468_p2, %p1465_p1 }
 0x2d8   :  { %1473 = shalt.err (!%p1470_p3)
}
 0x2d9   :  { %1066 = dma.vmem_to_hbm [thread:$0]  %s1061_s9, 1024, %s1707_s7, [#allocation4], %s1505_s15, %s1505_s15, %s1506_s16   ;;  %v1021_v47 = vadd.f32 %v1020_v46, %v1014_v45  ;;  %v1035_v48 = vmul.f32 %v1014_v45, %v958_v39  ;;  %v1041_v49 = vadd.f32 %v1040_v43, %v1034_v42  ;;  %v1036_v50 = vmul.f32 %v1015_v44, %v959_v35 }
 0x2da   :  { %vm1050_vm2 = vcmask 1040384   ;;  %s1515_s22 = smov [#allocation9]   ;;  %vm1052_vm3 = vcmask 1041408  }
 0x2db   :  { %v1022_v51 = vadd.f32 %v1021_v47, %v1015_v44  ;;  %v1042_v52 = vadd.f32 %v1041_v49, %v1035_v48  ;;  %s1073_s7 = sshll.u32 %s1515_s22, 4  ;;  %s1074_s7 = int_to_ptr.vmem [resolvable:$true] %s1073_s7 }
 0x2dc   :  { %s1474_s15 = scalar_lea.vmem %s1074_s7, 128  ;;  %p1479_p5 = scmp.lt.s32.totalorder %s1074_s7, %s1074_s7 }
 0x2dd   :  { %v1023_v53 = vrot.slane %v1022_v51, 4  ;;  %v1043_v54 = vadd.f32 %v1042_v52, %v1036_v50  ;;  %p1475_p4 = scmp.ne.s32.totalorder %s1074_s7, %s1474_s15  ;;  %p1480_p6 = scmp.lt.s32.totalorder %s1474_s15, %s1474_s15 }
 0x2df   :  { %v1024_v55 = vadd.f32 %v1023_v53, %v1022_v51  ;;  %v1044_v56 = vrot.slane %v1043_v54, 4  ;;  %p1481_p7 = por %p1480_p6, %p1479_p5 }
 0x2e1   :  { %v1045_v57 = vadd.f32 %v1044_v56, %v1043_v54  ;;  %v1025_v58 = vrot.slane %v1024_v55, 2  ;;  %p1482_p8 = pnand %p1481_p7, %p1475_p4 }
 0x2e3   :  { %v1026_v59 = vadd.f32 %v1025_v58, %v1024_v55  ;;  %v1046_v60 = vrot.slane %v1045_v57, 2 }
 0x2e5   :  { %v1027_v61 = vrot.slane %v1026_v59, 1  ;;  %v1047_v62 = vadd.f32 %v1046_v60, %v1045_v57 }
 0x2e7   :  { %v1048_v63 = vrot.slane %v1047_v62, 1  ;;  %v1028_v0 = vadd.f32 %v1027_v61, %v1026_v59 }
 0x2e9   :  { %v1049_v1 = vadd.f32 %v1048_v63, %v1047_v62 }
 0x2eb   :  { %v1051_v2 = vsel %vm1050_vm2, %v1028_v0, %v1049_v1 }
 0x2ec   :  { %v1053_v3 = vsel %vm1052_vm3, %v1051_v2, 0.0 }
 0x2ed   :  { %1054 = vst [vmem:[#allocation9] sm:$0xff] %v1053_v3 }
 0x2ee   :  { %1485 = shalt.err (!%p1482_p8)
}
 0x2ef   :  { %s1486_s20 = scalar_lea.hbm %s1708_s8, 128 }
 0x2f0   :  { %p1487_p9 = scmp.ne.s32.totalorder %s1708_s8, %s1486_s20  ;;  %p1490_p10 = scmp.lt.u32.totalorder %s1486_s20, %s1708_s8 }
 0x2f2   :  { %p1492_p11 = pnand %p1490_p10, %p1487_p9 }
 0x2f4   :  { %1495 = shalt.err (!%p1492_p11)
}
 0x2f5   :  { %1076 = dma.vmem_to_hbm [thread:$0]  %s1074_s7, 128, %s1708_s8, [#allocation10]  }
 0x2f6   :  { %1500 = dma.done.wait [#allocation4], 1024  }
 0x2f7   :  { %1501 = vsyncadd [#allocation4], 4294966272 }
 0x2f8   :  { %1502 = dma.done.wait [#allocation10], 128  }
 0x2f9   :  { %1503 = vsyncadd [#allocation10], 4294967168 }
 0x2fa   :  { %1083 = vsyncpa [#allocation3], 1 }
 0x2fb   :  { %1084 = vsyncpa [#allocation6], 1 }
 0x2fc   :  { %1085 = vsyncpa [#allocation4], 1 }
 0x2fd   :  { %1086 = vsyncpa [#allocation10], 1 }

</bundles_post_ra>
